<compile_context>
chip_gen: v7x
topology: tpu7x:2x2x1
jax: 0.10.0
libtpu: 0.0.40
codegen_flags: <defaults>
</compile_context>

<pallas_src>
import jax
import jax.numpy as jnp
from jax.experimental import pallas as pl
from jax.experimental.pallas import tpu as pltpu

HIDDEN = 64
FUSED = 2 * HIDDEN  # 128: lane-full fused hidden width (actor | critic)


def _round_up(n, m):
    return ((n + m - 1) // m) * m


def _policy_kernel(x_ref, w1_ref, w2_ref, w3_ref, b_ref, out_ref):
    x = x_ref[...]                      # (TB, S)
    b = b_ref[...]                      # (8, 128); rows 0/1/2 = b1/b2/b3
    b1 = b[0:1, :]
    b2 = b[1:2, :]
    b3 = b[2:3, :]

    # layer 1: fused actor|critic hidden, lane-full (TB, 128)
    h = jnp.tanh(jnp.dot(x, w1_ref[...], preferred_element_type=jnp.float32) + b1)
    # layer 2: block-diagonal 128x128 matmul (exactly one MXU tile)
    h = jnp.tanh(jnp.dot(h, w2_ref[...], preferred_element_type=jnp.float32) + b2)
    # layer 3: lane-padded heads -> single lane-dense output slab
    out_ref[...] = (jnp.dot(h, w3_ref[...], preferred_element_type=jnp.float32)
                    + b3)


def pack_policy_params(p):
    """Fuse the 12 per-layer tensors into 4 lane-dense arrays + sigma."""
    A = p["w3a"].shape[1]
    assert p["w1a"].shape[1] == HIDDEN and p["w1c"].shape[1] == HIDDEN
    assert A + 1 <= FUSED

    # layer 1: (S, 128)
    w1 = jnp.concatenate([p["w1a"], p["w1c"]], axis=1)
    b1 = jnp.concatenate([p["b1a"], p["b1c"]], axis=1)

    # layer 2: block-diagonal (128, 128)
    w2 = jnp.zeros((FUSED, FUSED), jnp.float32)
    w2 = w2.at[:HIDDEN, :HIDDEN].set(p["w2a"])
    w2 = w2.at[HIDDEN:, HIDDEN:].set(p["w2c"])
    b2 = jnp.concatenate([p["b2a"], p["b2c"]], axis=1)

    # layer 3: lane-padded (128, 128); cols [0:A] = action_mean, col A = value
    w3 = jnp.zeros((FUSED, FUSED), jnp.float32)
    w3 = w3.at[:HIDDEN, :A].set(p["w3a"])
    w3 = w3.at[HIDDEN:, A:A + 1].set(p["w3c"])
    b3 = jnp.zeros((1, FUSED), jnp.float32)
    b3 = b3.at[:, :A].set(p["b3a"])
    b3 = b3.at[:, A:A + 1].set(p["b3c"])

    # bias slab (8, 128): rows 0/1/2 = b1/b2/b3, rest zero padding
    bias = jnp.zeros((8, FUSED), jnp.float32)
    bias = bias.at[0:1, :].set(b1).at[1:2, :].set(b2).at[2:3, :].set(b3)

    # sigma is parameter-only: compute softplus once in plain JAX
    sigma = jax.nn.softplus(p["sigma"])[0]

    return dict(w1=w1, w2=w2, w3=w3, bias=bias, sigma=sigma, action_space=A)


def policy_forward(x, packed, *, block_b=512):
    """Returns (action_mean, sigma, value) matching Policy.forward semantics.

    x: (B, state_space) float32
    packed: output of pack_policy_params.
    The Normal distribution is parameterized by (action_mean, sigma).
    """
    B, S = x.shape
    A = packed["action_space"]
    w1, w2, w3, bias = packed["w1"], packed["w2"], packed["w3"], packed["bias"]

    # sublane-aligned batch tile; pad B up to a multiple of it
    tb = min(_round_up(block_b, 8), _round_up(max(B, 8), 8))
    b_pad = _round_up(max(B, tb), tb)
    if b_pad != B:
        x = jnp.pad(x, ((0, b_pad - B), (0, 0)))

    out = pl.pallas_call(
        _policy_kernel,
        out_shape=jax.ShapeDtypeStruct((b_pad, FUSED), jnp.float32),
        grid=(b_pad // tb,),
        in_specs=[
            pl.BlockSpec((tb, S), lambda i: (i, 0)),        # x tile (streams)
            pl.BlockSpec((S, FUSED), lambda i: (0, 0)),     # W1 (resident)
            pl.BlockSpec((FUSED, FUSED), lambda i: (0, 0)),  # W2 (resident)
            pl.BlockSpec((FUSED, FUSED), lambda i: (0, 0)),  # W3 (resident)
            pl.BlockSpec((8, FUSED), lambda i: (0, 0)),     # biases (resident)
        ],
        out_specs=pl.BlockSpec((tb, FUSED), lambda i: (i, 0)),
        compiler_params=pltpu.CompilerParams(
            dimension_semantics=("parallel",)),
    )(x, w1, w2, w3, bias)

    mean = out[:B, :A]
    value = out[:B, A]
    return mean, packed["sigma"], value


def init_policy_params(key, state_space, action_space, hidden=HIDDEN,
                       init_sigma=0.5):
    """Deterministic init mirroring Policy.init_weights():
    weights ~ N(0, 1), biases = 0, sigma = init_sigma."""
    ks = jax.random.split(key, 6)
    f32 = jnp.float32

    def lin(k, fan_in, fan_out):
        w = jax.random.normal(k, (fan_in, fan_out), dtype=f32)
        b = jnp.zeros((1, fan_out), dtype=f32)
        return w, b

    w1a, b1a = lin(ks[0], state_space, hidden)
    w2a, b2a = lin(ks[1], hidden, hidden)
    w3a, b3a = lin(ks[2], hidden, action_space)
    w1c, b1c = lin(ks[3], state_space, hidden)
    w2c, b2c = lin(ks[4], hidden, hidden)
    w3c, b3c = lin(ks[5], hidden, 1)
    sigma = jnp.full((1, action_space), init_sigma, dtype=f32)

    return dict(w1a=w1a, b1a=b1a, w2a=w2a, b2a=b2a, w3a=w3a, b3a=b3a,
                w1c=w1c, b1c=b1c, w2c=w2c, b2c=b2c, w3c=w3c, b3c=b3c,
                sigma=sigma)


def _reference_forward(x, p):
    """Pure-JAX reference (un-fused) for correctness check."""
    ha = jnp.tanh(x @ p["w1a"] + p["b1a"])
    ha = jnp.tanh(ha @ p["w2a"] + p["b2a"])
    mean = ha @ p["w3a"] + p["b3a"]
    sigma = jax.nn.softplus(p["sigma"])[0]
    hc = jnp.tanh(x @ p["w1c"] + p["b1c"])
    hc = jnp.tanh(hc @ p["w2c"] + p["b2c"])
    value = (hc @ p["w3c"] + p["b3c"]).squeeze(-1)
    return mean, sigma, value


if __name__ == "__main__":
    key = jax.random.PRNGKey(0)
    k_param, k_x = jax.random.split(key)

    batch = 2
    state_space = 8
    action_space = 4

    raw_params = init_policy_params(k_param, state_space, action_space)
    packed = pack_policy_params(raw_params)
    x = jax.random.normal(k_x, (batch, state_space), dtype=jnp.float32)

    mean, sigma, value = policy_forward(x, packed)
    jax.block_until_ready((mean, sigma, value))

    ref_mean, ref_sigma, ref_value = _reference_forward(x, raw_params)
    assert mean.shape == (batch, action_space)
    assert sigma.shape == (action_space,)
    assert value.shape == (batch,)
    assert jnp.allclose(mean, ref_mean, atol=1e-4, rtol=1e-4)
    assert jnp.allclose(sigma, ref_sigma, atol=1e-6, rtol=1e-6)
    assert jnp.allclose(value, ref_value, atol=1e-4, rtol=1e-4)

    print("KERNEL_OK")
</pallas_src>

<mosaic_0001>
module attributes {stable_mosaic.version = 11 : i64} {
  func.func @_policy_kernel(%arg0: i32, %arg1: memref<8x8xf32, #tpu.memory_space<vmem>>, %arg2: memref<8x128xf32, #tpu.memory_space<vmem>>, %arg3: memref<128x128xf32, #tpu.memory_space<vmem>>, %arg4: memref<128x128xf32, #tpu.memory_space<vmem>>, %arg5: memref<8x128xf32, #tpu.memory_space<vmem>>, %arg6: memref<8x128xf32, #tpu.memory_space<vmem>>) attributes {dimension_semantics = [#tpu.dimension_semantics<parallel>], iteration_bounds = array<i64: 1>, scalar_prefetch = 0 : i64, scratch_operands = 0 : i64, tpu.core_type = #tpu.core_type<tc>, window_params = [{transform_indices = @transform_0, window_bounds = array<i64: 8, 8>}, {pipeline_mode = #tpu.pipeline_mode<synchronous>, transform_indices = @transform_1, window_bounds = array<i64: 8, 128>}, {pipeline_mode = #tpu.pipeline_mode<synchronous>, transform_indices = @transform_2, window_bounds = array<i64: 128, 128>}, {pipeline_mode = #tpu.pipeline_mode<synchronous>, transform_indices = @transform_3, window_bounds = array<i64: 128, 128>}, {pipeline_mode = #tpu.pipeline_mode<synchronous>, transform_indices = @transform_4, window_bounds = array<i64: 8, 128>}, {transform_indices = @transform_5, window_bounds = array<i64: 8, 128>}]} {
    %c0 = arith.constant 0 : index
    %c0_0 = arith.constant 0 : index
    %0 = vector.load %arg1[%c0, %c0_0] : memref<8x8xf32, #tpu.memory_space<vmem>>, vector<8x8xf32>
    %c0_1 = arith.constant 0 : index
    %c0_2 = arith.constant 0 : index
    %1 = vector.load %arg5[%c0_1, %c0_2] : memref<8x128xf32, #tpu.memory_space<vmem>>, vector<8x128xf32>
    %2 = vector.extract_strided_slice %1 {offsets = [0, 0], sizes = [1, 128], strides = [1, 1]} : vector<8x128xf32> to vector<1x128xf32>
    %3 = vector.extract_strided_slice %1 {offsets = [1, 0], sizes = [1, 128], strides = [1, 1]} : vector<8x128xf32> to vector<1x128xf32>
    %4 = vector.extract_strided_slice %1 {offsets = [2, 0], sizes = [1, 128], strides = [1, 1]} : vector<8x128xf32> to vector<1x128xf32>
    %c0_3 = arith.constant 0 : index
    %c0_4 = arith.constant 0 : index
    %5 = vector.load %arg2[%c0_3, %c0_4] : memref<8x128xf32, #tpu.memory_space<vmem>>, vector<8x128xf32>
    %cst = arith.constant dense<0.000000e+00> : vector<8x128xf32>
    %6 = tpu.matmul %0, %5, %cst {dimension_numbers = #tpu.dot_dimension_numbers<[1], [0], [0], [1], [0, 0, 1, 1], [], []>} : vector<8x8xf32>, vector<8x128xf32>, vector<8x128xf32> -> vector<8x128xf32>
    %7 = vector.broadcast %2 : vector<1x128xf32> to vector<8x128xf32>
    %8 = arith.addf %6, %7 : vector<8x128xf32>
    %9 = math.tanh %8 : vector<8x128xf32>
    %c0_5 = arith.constant 0 : index
    %c0_6 = arith.constant 0 : index
    %10 = vector.load %arg3[%c0_5, %c0_6] : memref<128x128xf32, #tpu.memory_space<vmem>>, vector<128x128xf32>
    %cst_7 = arith.constant dense<0.000000e+00> : vector<8x128xf32>
    %11 = tpu.matmul %9, %10, %cst_7 {dimension_numbers = #tpu.dot_dimension_numbers<[1], [0], [0], [1], [0, 0, 1, 1], [], []>} : vector<8x128xf32>, vector<128x128xf32>, vector<8x128xf32> -> vector<8x128xf32>
    %12 = vector.broadcast %3 : vector<1x128xf32> to vector<8x128xf32>
    %13 = arith.addf %11, %12 : vector<8x128xf32>
    %14 = math.tanh %13 : vector<8x128xf32>
    %c0_8 = arith.constant 0 : index
    %c0_9 = arith.constant 0 : index
    %15 = vector.load %arg4[%c0_8, %c0_9] : memref<128x128xf32, #tpu.memory_space<vmem>>, vector<128x128xf32>
    %cst_10 = arith.constant dense<0.000000e+00> : vector<8x128xf32>
    %16 = tpu.matmul %14, %15, %cst_10 {dimension_numbers = #tpu.dot_dimension_numbers<[1], [0], [0], [1], [0, 0, 1, 1], [], []>} : vector<8x128xf32>, vector<128x128xf32>, vector<8x128xf32> -> vector<8x128xf32>
    %17 = vector.broadcast %4 : vector<1x128xf32> to vector<8x128xf32>
    %18 = arith.addf %16, %17 : vector<8x128xf32>
    %c0_11 = arith.constant 0 : index
    %c0_12 = arith.constant 0 : index
    %19 = vector.load %arg6[%c0_11, %c0_12] : memref<8x128xf32, #tpu.memory_space<vmem>>, vector<8x128xf32>
    tpu.vector_store %arg6[%c0_11, %c0_12], %18 {strides = array<i32>} : memref<8x128xf32, #tpu.memory_space<vmem>>, vector<8x128xf32>,
    return
  }
  func.func @transform_0(%arg0: i32) -> (i32, i32) {
    %c0_i32 = arith.constant 0 : i32
    %c0_i32_0 = arith.constant 0 : i32
    return %arg0, %c0_i32 : i32, i32
  }
  func.func @transform_1(%arg0: i32) -> (i32, i32) {
    %c0_i32 = arith.constant 0 : i32
    %c0_i32_0 = arith.constant 0 : i32
    %c0_i32_1 = arith.constant 0 : i32
    return %c0_i32, %c0_i32_0 : i32, i32
  }
  func.func @transform_2(%arg0: i32) -> (i32, i32) {
    %c0_i32 = arith.constant 0 : i32
    %c0_i32_0 = arith.constant 0 : i32
    %c0_i32_1 = arith.constant 0 : i32
    return %c0_i32, %c0_i32_0 : i32, i32
  }
  func.func @transform_3(%arg0: i32) -> (i32, i32) {
    %c0_i32 = arith.constant 0 : i32
    %c0_i32_0 = arith.constant 0 : i32
    %c0_i32_1 = arith.constant 0 : i32
    return %c0_i32, %c0_i32_0 : i32, i32
  }
  func.func @transform_4(%arg0: i32) -> (i32, i32) {
    %c0_i32 = arith.constant 0 : i32
    %c0_i32_0 = arith.constant 0 : i32
    %c0_i32_1 = arith.constant 0 : i32
    return %c0_i32, %c0_i32_0 : i32, i32
  }
  func.func @transform_5(%arg0: i32) -> (i32, i32) {
    %c0_i32 = arith.constant 0 : i32
    %c0_i32_0 = arith.constant 0 : i32
    return %arg0, %c0_i32 : i32, i32
  }
}

</mosaic_0001>

<bundles_post_ra>
// kernel: tpu_custom_call.1
= control target key start
LH: loop header
LB: loop body
LE: loop exit
PB: predicated region body
PF: predicated region fallthrough
CT: control target
= control target key end

     0   :  { %10 = vsyncpa [#allocation3], 0  ;;  %s767_s0 = inlined_call_operand.hbm [shape: f32[8,8], index: 0, kind: input, shape index: {}]   ;;  %s768_s1 = inlined_call_operand.hbm [shape: f32[8,128], index: 1, kind: input, shape index: {}]   ;;  %s769_s2 = inlined_call_operand.hbm [shape: f32[128,128], index: 2, kind: input, shape index: {}]   ;;  %s770_s3 = inlined_call_operand.hbm [shape: f32[128,128], index: 3, kind: input, shape index: {}]   ;;  %s771_s4 = inlined_call_operand.vmem [shape: f32[8,128], index: 4, kind: input, shape index: {}]   ;;  %s772_s5 = inlined_call_operand.hbm [shape: f32[8,128], index: 5, kind: output, shape index: {}]  }
   0x1   :  { %11 = vsyncpa [#allocation6], 0 }
   0x2   :  { %12 = vsyncpa [#allocation9], 0 }
   0x3   :  { %13 = vsyncpa [#allocation4], 0  ;;  %s645_s18 = smov [#allocation5]   ;;  %s646_s20 = smov [#allocation2]  }
   0x4   :  { %s30_s19 = sshll.u32 %s645_s18, 4  ;;  %s20_s21 = sshll.u32 %s646_s20, 4  ;;  %s31_s19 = int_to_ptr.vmem [resolvable:$true] %s30_s19  ;;  %s21_s21 = int_to_ptr.vmem [resolvable:$true] %s20_s21 }
   0x5   :  { %s527_s24 = scalar_lea.hbm %s768_s1, 128 }
   0x6   :  { %p528_p0 = scmp.ne.s32.totalorder %s768_s1, %s527_s24  ;;  %p531_p1 = scmp.lt.u32.totalorder %s527_s24, %s768_s1 }
   0x8   :  { %p533_p2 = pnand %p531_p1, %p528_p0 }
   0xa   :  { %536 = shalt.err (!%p533_p2)
}
   0xb   :  { %s537_s29 = scalar_lea.vmem %s31_s19, 128  ;;  %p542_p4 = scmp.lt.s32.totalorder %s31_s19, %s31_s19 }
   0xc   :  { %p538_p3 = scmp.ne.s32.totalorder %s31_s19, %s537_s29  ;;  %p543_p5 = scmp.lt.s32.totalorder %s537_s29, %s537_s29 }
   0xe   :  { %p544_p6 = por %p543_p5, %p542_p4 }
  0x10   :  { %p545_p7 = pnand %p544_p6, %p538_p3 }
  0x12   :  { %548 = shalt.err (!%p545_p7)
}
  0x13   :  { %33 = dma.hbm_to_vmem [thread:$0]  %s768_s1, 128, %s31_s19, [#allocation6]  }
  0x14   :  { %s549_s9 = scalar_lea.hbm %s767_s0, 128 }
  0x15   :  { %p550_p8 = scmp.ne.s32.totalorder %s767_s0, %s549_s9  ;;  %p553_p9 = scmp.lt.u32.totalorder %s549_s9, %s767_s0 }
  0x17   :  { %p555_p10 = pnand %p553_p9, %p550_p8 }
  0x19   :  { %558 = shalt.err (!%p555_p10)
}
  0x1a   :  { %s559_s14 = scalar_lea.vmem %s21_s21, 128  ;;  %p564_p12 = scmp.lt.s32.totalorder %s21_s21, %s21_s21 }
  0x1b   :  { %p560_p11 = scmp.ne.s32.totalorder %s21_s21, %s559_s14  ;;  %p565_p13 = scmp.lt.s32.totalorder %s559_s14, %s559_s14 }
  0x1d   :  { %p566_p0 = por %p565_p13, %p564_p12 }
  0x1f   :  { %p567_p1 = pnand %p566_p0, %p560_p11 }
  0x21   :  { %570 = shalt.err (!%p567_p1)
}
  0x22   :  { %23 = dma.hbm_to_vmem [thread:$0]  %s767_s0, 128, %s21_s21, [#allocation3]  }
  0x23   :  { %s647_s16 = smov [#allocation7]   ;;  %s571_s20 = scalar_lea.hbm %s769_s2, 2048 }
  0x24   :  { %s39_s17 = sshll.u32 %s647_s16, 4  ;;  %p572_p2 = scmp.ne.s32.totalorder %s769_s2, %s571_s20  ;;  %s40_s17 = int_to_ptr.vmem [resolvable:$true] %s39_s17 }
  0x25   :  { %p575_p3 = scmp.lt.u32.totalorder %s571_s20, %s769_s2 }
  0x27   :  { %p577_p4 = pnand %p575_p3, %p572_p2 }
  0x29   :  { %580 = shalt.err (!%p577_p4)
}
  0x2a   :  { %s581_s26 = scalar_lea.vmem %s40_s17, 2048  ;;  %p586_p6 = scmp.lt.s32.totalorder %s40_s17, %s40_s17 }
  0x2b   :  { %p582_p5 = scmp.ne.s32.totalorder %s40_s17, %s581_s26  ;;  %p587_p7 = scmp.lt.s32.totalorder %s581_s26, %s581_s26 }
  0x2d   :  { %p588_p8 = por %p587_p7, %p586_p6 }
  0x2f   :  { %p589_p9 = pnand %p588_p8, %p582_p5 }
  0x31   :  { %592 = shalt.err (!%p589_p9)
}
  0x32   :  { %s648_s0 = smov 128   ;;  %s649_s21 = smov 8  }
  0x33   :  { %45 = dma.hbm_to_vmem [thread:$0]  %s769_s2, 2048, %s40_s17, [#allocation6], %s648_s0, %s648_s0, %s649_s21  }
  0x34   :  { %s650_s29 = smov [#allocation8]   ;;  %s593_s8 = scalar_lea.hbm %s770_s3, 2048 }
  0x35   :  { %s51_s30 = sshll.u32 %s650_s29, 4  ;;  %p594_p10 = scmp.ne.s32.totalorder %s770_s3, %s593_s8  ;;  %s52_s30 = int_to_ptr.vmem [resolvable:$true] %s51_s30 }
  0x36   :  { %p597_p11 = scmp.lt.u32.totalorder %s593_s8, %s770_s3 }
  0x38   :  { %p599_p12 = pnand %p597_p11, %p594_p10 }
  0x3a   :  { %602 = shalt.err (!%p599_p12)
}
  0x3b   :  { %s603_s13 = scalar_lea.vmem %s52_s30, 2048  ;;  %p608_p0 = scmp.lt.s32.totalorder %s52_s30, %s52_s30 }
  0x3c   :  { %p604_p13 = scmp.ne.s32.totalorder %s52_s30, %s603_s13  ;;  %p609_p1 = scmp.lt.s32.totalorder %s603_s13, %s603_s13 }
  0x3e   :  { %p610_p2 = por %p609_p1, %p608_p0 }
  0x40   :  { %p611_p3 = pnand %p610_p2, %p604_p13 }
  0x42   :  { %614 = shalt.err (!%p611_p3)
}
  0x43   :  { %57 = dma.hbm_to_vmem [thread:$0]  %s770_s3, 2048, %s52_s30, [#allocation9], %s648_s0, %s648_s0, %s649_s21  }
  0x44   :  { %637 = dma.done.wait [#allocation3], 128  }
  0x45   :  { %638 = vsyncadd [#allocation3], 4294967168 }
  0x46   :  { %639 = dma.done.wait [#allocation6], 2176  }
  0x47   :  { %640 = vsyncadd [#allocation6], 4294965120 }
  0x48   :  { %641 = dma.done.wait [#allocation9], 2048  }
  0x49   :  { %642 = vsyncadd [#allocation9], 4294965248  ;;  %v651_v0 = vmov 0.0   ;;  %vm652_vm0 = vmmov 0   ;;  %v653_v1 = vmov 0.0|0.0   ;;  %vm79_vm1 = vcmask 64512  }
  0x4a   :  { %390 = vmatprep.subr.mxu0 %v651_v0  ;;  %392 = vmatprep.mubr.msk.f32.mxu0 %vm652_vm0, %v651_v0  ;;  %v74_v2 = vld [vmem:[#allocation5] sm:$0xff]  ;;  %v72_v3 = vld [vmem:[#allocation2] sm:$0xff]  ;;  %v154_v4 = vld [vmem:[#allocation7] sm:$0xff]  ;;  %v75_v43 = vlaneseq }
  0x4b   :  { %465 = vmatprep.subr.bf16.mxu1 %v653_v1  ;;  %427 = vmatprep.mubr.msk.f32.mxu1 %vm652_vm0, %v651_v0  ;;  %v155_v5 = vld [vmem:[#allocation7 + $0x8] sm:$0xff]  ;;  %v156_v6 = vld [vmem:[#allocation7 + $0x10] sm:$0xff]  ;;  %v157_v7 = vld [vmem:[#allocation7 + $0x18] sm:$0xff] }
  0x4c   :  { %391 = vmatpush3.msra.mxu0 %v74_v2  ;;  %v466_v8 = vpack.c.bf16 %v155_v5, %v154_v4  ;;  %v469_v9 = vpack.c.bf16 %v157_v7, %v156_v6  ;;  %v158_v10 = vld [vmem:[#allocation7 + $0x20] sm:$0xff]  ;;  %v159_v11 = vld [vmem:[#allocation7 + $0x28] sm:$0xff]  ;;  %v160_v13 = vld [vmem:[#allocation7 + $0x30] sm:$0xff]  ;;  %v76_v44 = vshrl.u32 %v75_v43, 7 }
  0x4d   :  { %393 = vmatmul.mubr.msk.f32.vlgmr.msra.gmra.mrb[0].mxu0 %vm79_vm1, %v72_v3  ;;  %489 = vmatprep.subr.bf16.mxu0 %v653_v1  ;;  %v472_v12 = vpack.c.bf16 %v159_v11, %v158_v10  ;;  %v161_v14 = vld [vmem:[#allocation7 + $0x38] sm:$0xff]  ;;  %v162_v16 = vld [vmem:[#allocation7 + $0x40] sm:$0xff]  ;;  %v163_v17 = vld [vmem:[#allocation7 + $0x48] sm:$0xff] }
  0x4e   :  { %462 = vmatprep.mubr.msk.f32.mxu0 %vm652_vm0, %v651_v0  ;;  %467 = vmatpush3.bf16.msra.mxu1 %v466_v8  ;;  %v475_v15 = vpack.c.bf16 %v161_v14, %v160_v13  ;;  %v478_v18 = vpack.c.bf16 %v163_v17, %v162_v16  ;;  %v164_v19 = vld [vmem:[#allocation7 + $0x50] sm:$0xff]  ;;  %v165_v20 = vld [vmem:[#allocation7 + $0x58] sm:$0xff]  ;;  %v166_v22 = vld [vmem:[#allocation7 + $0x60] sm:$0xff]  ;;  %v77_v45 = vsub.s32 0, %v76_v44  ;;  %v172_v61 = vsub.s32 1, %v76_v44 }
  0x4f   :  { %468 = vmatprep.subr.bf16.mxu1 %v653_v1  ;;  %v481_v21 = vpack.c.bf16 %v165_v20, %v164_v19  ;;  %v167_v23 = vld [vmem:[#allocation7 + $0x68] sm:$0xff]  ;;  %v168_v25 = vld [vmem:[#allocation7 + $0x70] sm:$0xff]  ;;  %v169_v26 = vld [vmem:[#allocation7 + $0x78] sm:$0xff]  ;;  %v263_v4 = vsub.s32 2, %v76_v44 }
  0x50   :  { %v484_v24 = vpack.c.bf16 %v167_v23, %v166_v22  ;;  %v487_v27 = vpack.c.bf16 %v169_v26, %v168_v25  ;;  %v245_v28 = vld [vmem:[#allocation8] sm:$0xff]  ;;  %v246_v29 = vld [vmem:[#allocation8 + $0x8] sm:$0xff]  ;;  %v247_v30 = vld [vmem:[#allocation8 + $0x10] sm:$0xff] }
  0x51   :  { %v490_v31 = vpack.c.bf16 %v246_v29, %v245_v28  ;;  %v248_v32 = vld [vmem:[#allocation8 + $0x18] sm:$0xff]  ;;  %v249_v34 = vld [vmem:[#allocation8 + $0x20] sm:$0xff]  ;;  %v250_v35 = vld [vmem:[#allocation8 + $0x28] sm:$0xff] }
  0x52   :  { %470 = vmatpush3.bf16.msra.mxu1 %v469_v9  ;;  %v493_v33 = vpack.c.bf16 %v248_v32, %v247_v30  ;;  %v496_v36 = vpack.c.bf16 %v250_v35, %v249_v34  ;;  %v251_v37 = vld [vmem:[#allocation8 + $0x30] sm:$0xff]  ;;  %v252_v38 = vld [vmem:[#allocation8 + $0x38] sm:$0xff]  ;;  %v253_v40 = vld [vmem:[#allocation8 + $0x40] sm:$0xff] }
  0x53   :  { %471 = vmatprep.subr.bf16.mxu1 %v653_v1  ;;  %491 = vmatpush3.bf16.msra.mxu0 %v490_v31  ;;  %v499_v39 = vpack.c.bf16 %v252_v38, %v251_v37  ;;  %v254_v41 = vld [vmem:[#allocation8 + $0x48] sm:$0xff]  ;;  %v73_v46 = vld [vmem:[%s771_s4] sm:$0xff]  ;;  %v256_v53 = vld [vmem:[#allocation8 + $0x58] sm:$0xff]  ;;  %s654_s4 = smov [#allocation10]  }
  0x54   :  { %492 = vmatprep.subr.bf16.mxu0 %v653_v1  ;;  %v502_v42 = vpack.c.bf16 %v254_v41, %v253_v40  ;;  %v78_v47 = vrot.slane %v73_v46, %v77_v45  ;;  %v255_v52 = vld [vmem:[#allocation8 + $0x50] sm:$0xff]  ;;  %v257_v55 = vld [vmem:[#allocation8 + $0x60] sm:$0xff]  ;;  %v258_v56 = vld [vmem:[#allocation8 + $0x68] sm:$0xff]  ;;  %v173_v62 = vrot.slane %v73_v46, %v172_v61  ;;  %v264_v5 = vrot.slane %v73_v46, %v263_v4  ;;  %s342_s15 = sshll.u32 %s654_s4, 4  ;;  %s343_s15 = int_to_ptr.vmem [resolvable:$true] %s342_s15 }
  0x55   :  { %v505_v54 = vpack.c.bf16 %v256_v53, %v255_v52  ;;  %v508_v57 = vpack.c.bf16 %v258_v56, %v257_v55  ;;  %v259_v58 = vld [vmem:[#allocation8 + $0x70] sm:$0xff]  ;;  %v260_v59 = vld [vmem:[#allocation8 + $0x78] sm:$0xff]  ;;  %s615_s16 = scalar_lea.vmem %s343_s15, 128  ;;  %p620_p5 = scmp.lt.s32.totalorder %s343_s15, %s343_s15 }
  0x56   :  { %473 = vmatpush3.bf16.msra.mxu1 %v472_v12  ;;  %v511_v60 = vpack.c.bf16 %v260_v59, %v259_v58  ;;  %p616_p4 = scmp.ne.s32.totalorder %s343_s15, %s615_s16  ;;  %p621_p6 = scmp.lt.s32.totalorder %s615_s16, %s615_s16 }
  0x57   :  { %474 = vmatprep.subr.bf16.mxu1 %v653_v1  ;;  %494 = vmatpush3.bf16.msra.mxu0 %v493_v33 }
  0x58   :  { %495 = vmatprep.subr.bf16.mxu0 %v653_v1  ;;  %p622_p7 = por %p621_p6, %p620_p5 }
  0x5a   :  { %476 = vmatpush3.bf16.msra.mxu1 %v475_v15  ;;  %p623_p8 = pnand %p622_p7, %p616_p4 }
  0x5b   :  { %477 = vmatprep.subr.bf16.mxu1 %v653_v1  ;;  %497 = vmatpush3.bf16.msra.mxu0 %v496_v36 }
  0x5c   :  { %498 = vmatprep.subr.bf16.mxu0 %v653_v1 }
  0x5e   :  { %479 = vmatpush3.bf16.msra.mxu1 %v478_v18 }
  0x5f   :  { %480 = vmatprep.subr.bf16.mxu1 %v653_v1  ;;  %500 = vmatpush3.bf16.msra.mxu0 %v499_v39 }
  0x60   :  { %501 = vmatprep.subr.bf16.mxu0 %v653_v1 }
  0x62   :  { %482 = vmatpush3.bf16.msra.mxu1 %v481_v21 }
  0x63   :  { %483 = vmatprep.subr.bf16.mxu1 %v653_v1  ;;  %503 = vmatpush3.bf16.msra.mxu0 %v502_v42 }
  0x64   :  { %504 = vmatprep.subr.bf16.mxu0 %v653_v1 }
  0x66   :  { %485 = vmatpush3.bf16.msra.mxu1 %v484_v24 }
  0x67   :  { %486 = vmatprep.subr.bf16.mxu1 %v653_v1  ;;  %506 = vmatpush3.bf16.msra.mxu0 %v505_v54 }
  0x68   :  { %507 = vmatprep.subr.bf16.mxu0 %v653_v1 }
  0x6a   :  { %488 = vmatpush3.bf16.msra.mxu1 %v487_v27 }
  0x6b   :  { %509 = vmatpush3.bf16.msra.mxu0 %v508_v57 }
  0x6c   :  { %510 = vmatprep.subr.bf16.mxu0 %v653_v1 }
  0x6f   :  { %512 = vmatpush3.bf16.msra.mxu0 %v511_v60 }
 0x120   :  { %v149_v48 = vpop.f32.mrb[0].mxu0 }
 0x121   :  { %v150_v49 = vadd.f32 %v149_v48, %v78_v47  ;;  %v394_v50 = vpop.f32.mrb[1].mxu0 }
 0x123   :  { %523 = vtanh.f32 %v150_v49 }
 0x12d   :  { %v524_v51 = vpop.eup %523 }
 0x12e   :  { %428 = vmatmul.mubr.f32.vlgmr.msra.gmra.mrb[0].mxu1 %v524_v51 }
 0x201   :  { %v240_v63 = vpop.f32.mrb[0].mxu1 }
 0x202   :  { %v241_v0 = vadd.f32 %v240_v63, %v173_v62  ;;  %v429_v2 = vpop.f32.mrb[1].mxu1 }
 0x204   :  { %525 = vtanh.f32 %v241_v0 }
 0x20e   :  { %v526_v3 = vpop.eup %525 }
 0x20f   :  { %463 = vmatmul.mubr.f32.vlgmr.msra.gmra.mrb[2].mxu0 %v526_v3 }
 0x2e2   :  { %v331_v6 = vpop.f32.mrb[2].mxu0 }
 0x2e3   :  { %v332_v7 = vadd.f32 %v331_v6, %v264_v5  ;;  %v464_v8 = vpop.f32.mrb[3].mxu0 }
 0x2e5   :  { %335 = vst [vmem:[#allocation10] sm:$0xff] %v332_v7 }
 0x2e6   :  { %626 = shalt.err (!%p623_p8)
}
 0x2e7   :  { %s627_s19 = scalar_lea.hbm %s772_s5, 128 }
 0x2e8   :  { %p628_p9 = scmp.ne.s32.totalorder %s772_s5, %s627_s19  ;;  %p631_p10 = scmp.lt.u32.totalorder %s627_s19, %s772_s5 }
 0x2ea   :  { %p633_p11 = pnand %p631_p10, %p628_p9 }
 0x2ec   :  { %636 = shalt.err (!%p633_p11)
}
 0x2ed   :  { %345 = dma.vmem_to_hbm [thread:$0]  %s343_s15, 128, %s772_s5, [#allocation4]  }
 0x2ee   :  { %643 = dma.done.wait [#allocation4], 128  }
 0x2ef   :  { %644 = vsyncadd [#allocation4], 4294967168 }
 0x2f0   :  { %349 = vsyncpa [#allocation3], 1 }
 0x2f1   :  { %350 = vsyncpa [#allocation6], 1 }
 0x2f2   :  { %351 = vsyncpa [#allocation9], 1 }
 0x2f3   :  { %352 = vsyncpa [#allocation4], 1 }

</bundles_post_ra>
